<compile_context>
chip_gen: v7x
topology: tpu7x:2x2x1
jax: 0.10.0
libtpu: 0.0.40
codegen_flags: <defaults>
</compile_context>

<pallas_src>
from typing import List, Tuple

import jax
import jax.numpy as jnp
from jax.experimental import pallas as pl
from jax.experimental.pallas import tpu as pltpu


# ---------------------------------------------------------------------------
# Model configuration (synthetic, deterministic) — matches the toy module:
# each stage = list of parallel sublayers, each sublayer = Linear->ReLU->Linear.
# ---------------------------------------------------------------------------
N_INPUTS = 8
STAGE_STRUCTURE: List[List[List[Tuple[int, int]]]] = [
    # stage 0: two parallel sub-MLPs, each 8 -> 16 -> 4  (concat -> 8)
    [[(8, 16), (16, 4)], [(8, 16), (16, 4)]],
    # stage 1: two parallel sub-MLPs, each 8 -> 16 -> 4  (concat -> 8)
    [[(8, 16), (16, 4)], [(8, 16), (16, 4)]],
]

# Fused-chain dims for this structure:
#   x(8) -> concat-of-first-Linears (32) -> ReLU
#        -> (blockdiag second Linears of stage0) ∘ (concat first Linears of stage1) (32) -> ReLU
#        -> blockdiag second Linears of stage1 (8)
D_IN = N_INPUTS
D_HID = sum(sub[0][1] for sub in STAGE_STRUCTURE[0])     # 32
D_OUT = sum(sub[-1][1] for sub in STAGE_STRUCTURE[-1])   # 8

MAX_BATCH_TILE = 16384   # lanes per grid step (multiple of 128); per-step VMEM
                         # stays ~16 MiB even with generous temporaries, well
                         # under v7x's 64 MiB and v5e/v6e's 128 MiB.


def _cdiv(a: int, b: int) -> int:
    return (a + b - 1) // b


def _round_up(a: int, m: int) -> int:
    return _cdiv(a, m) * m


def init_params(key):
    """Deterministic params: W ~ U(0,1) (PyTorch layout (out,in)), b = 0."""
    params = []  # flat list of (W_T (in,out), b (1,out)) in traversal order
    for stage in STAGE_STRUCTURE:
        for sublayer in stage:
            for (d_in, d_out) in sublayer:
                key, wk = jax.random.split(key)
                w = jax.random.uniform(wk, (d_out, d_in), jnp.float32, 0.0, 1.0)
                b = jnp.zeros((d_out,), jnp.float32)
                params.append((w.T, b.reshape(1, d_out)))
    return params


# ---------------------------------------------------------------------------
# Wrapper-side algebraic fusion (exact; only fp summation order changes).
# ---------------------------------------------------------------------------
def _block_diag(mats):
    rows = sum(m.shape[0] for m in mats)
    cols = sum(m.shape[1] for m in mats)
    out = jnp.zeros((rows, cols), mats[0].dtype)
    r = c = 0
    for m in mats:
        out = out.at[r:r + m.shape[0], c:c + m.shape[1]].set(m)
        r += m.shape[0]
        c += m.shape[1]
    return out


def _fuse_params(params, compute_dtype=jnp.float32):
    """Fold per-linear params into a 3-matmul chain in transposed layout.

    Returns (all feature-major, batch on lanes):
      w0  : (D_HID, D_IN)    h0 = relu(w0 @ xT + b01[0])
      w1  : (D_HID, D_HID)   h1 = relu(w1 @ h0 + b01[1])
      w2  : (D_OUT, D_HID)   y  = w2 @ h1 + b2          (un-padded last matmul)
      b01 : (2, D_HID, 1)    column biases for the two hidden layers (f32)
      b2  : (D_OUT, 1)       output bias (f32)
    """
    idx = 0
    stages = []
    for stage in STAGE_STRUCTURE:
        firsts, seconds = [], []
        for sublayer in stage:
            assert len(sublayer) == 2, "sublayer must be Linear->ReLU->Linear"
            firsts.append(params[idx])
            seconds.append(params[idx + 1])
            idx += 2
        w_in = jnp.concatenate([w for w, _ in firsts], axis=1)     # (in, sum_hid)
        b_in = jnp.concatenate([b for _, b in firsts], axis=1)     # (1, sum_hid)
        w_out = _block_diag([w for w, _ in seconds])               # (sum_hid, sum_out)
        b_out = jnp.concatenate([b for _, b in seconds], axis=1)   # (1, sum_out)
        stages.append(((w_in, b_in), (w_out, b_out)))

    # No nonlinearity between a stage's second Linear and the next stage's
    # first Linear -> compose them.
    chain = [stages[0][0]]
    for s in range(1, len(stages)):
        w_prev, b_prev = stages[s - 1][1]
        w_in, b_in = stages[s][0]
        chain.append((w_prev @ w_in, b_prev @ w_in + b_in))
    chain.append(stages[-1][1])

    assert len(chain) == 3, "kernel is specialized for the 2-stage structure"
    (a0, c0), (a1, c1), (a2, c2) = chain
    assert a0.shape == (D_IN, D_HID)
    assert a1.shape == (D_HID, D_HID)
    assert a2.shape == (D_HID, D_OUT)

    w0 = a0.T.astype(compute_dtype)                        # (D_HID, D_IN)
    w1 = a1.T.astype(compute_dtype)                        # (D_HID, D_HID)
    w2 = a2.T.astype(compute_dtype)                        # (D_OUT, D_HID) -- no padding
    b01 = jnp.stack([c0.T, c1.T]).astype(jnp.float32)      # (2, D_HID, 1)
    b2 = c2.T.astype(jnp.float32)                          # (D_OUT, 1)
    return w0, w1, w2, b01, b2


# ---------------------------------------------------------------------------
# Pallas kernel: 3 fused matmuls per batch tile, activations (features, TB)
# with the batch tile on the 128-wide lane axis (lane-dense, unmasked stores).
# Param refs use constant index_maps -> fetched once, VMEM-resident.
# Accumulation is always f32 (preferred_element_type); operands may be bf16.
# ---------------------------------------------------------------------------
def _fused_forward_kernel(w0_ref, w1_ref, w2_ref, b01_ref, b2_ref, x_ref, o_ref):
    cdt = w0_ref.dtype
    x = x_ref[...].astype(cdt)                                            # (D_IN, TB)
    h = jnp.dot(w0_ref[...], x, preferred_element_type=jnp.float32) + b01_ref[0]
    h = jnp.maximum(h, 0.0)                                               # (D_HID, TB)
    h = jnp.dot(w1_ref[...], h.astype(cdt),
                preferred_element_type=jnp.float32) + b01_ref[1]
    h = jnp.maximum(h, 0.0)                                               # (D_HID, TB)
    y = jnp.dot(w2_ref[...], h.astype(cdt),
                preferred_element_type=jnp.float32) + b2_ref[...]         # (D_OUT, TB)
    o_ref[...] = y.astype(o_ref.dtype)


def _choose_tile(batch: int):
    """Padding-balanced tile size (multiple of 128), >=2 tiles when batch>256."""
    n_tiles = _cdiv(batch, MAX_BATCH_TILE)
    # Guarantee at least two grid steps when there is enough work so the
    # "parallel" grid axis can shard across the two v7x TensorCores.
    if batch > 2 * 128 and n_tiles < 2:
        n_tiles = 2
    tb = _round_up(_cdiv(batch, n_tiles), 128)
    b_pad = _round_up(batch, tb)
    return tb, b_pad


def _vmem_limit_bytes(tb: int, param_bytes: int) -> int:
    io_bytes = 2 * (D_IN + D_OUT) * tb * 4     # double-buffered x / y tiles
    act_bytes = 6 * D_HID * tb * 4             # activation temporaries (generous)
    total = io_bytes + act_bytes + 2 * param_bytes + (2 << 20)
    # Keep at least v5e's default scoped limit, stay well under v7x's 64 MiB.
    return min(max(total, 16 << 20), 48 << 20)


def parallel_serialized_forward_t(xt, params, *, compute_dtype=jnp.float32):
    """Fast path: feature-major input (D_IN, batch) -> (D_OUT, batch).

    Keeping the feature-major layout across the call boundary avoids the
    host-side transpose/pad round trip (the dominant HBM cost for this tiny
    model).  Use this entry point when the producer/consumer can.
    """
    d, batch = xt.shape
    assert d == D_IN
    if batch == 0:
        return jnp.zeros((D_OUT, 0), jnp.float32)

    w0, w1, w2, b01, b2 = _fuse_params(params, compute_dtype)

    tb, b_pad = _choose_tile(batch)
    grid = (b_pad // tb,)

    xt = xt.astype(jnp.float32)
    if b_pad != batch:
        xt = jnp.pad(xt, ((0, 0), (0, b_pad - batch)))

    param_bytes = int(sum(a.size * a.dtype.itemsize for a in (w0, w1, w2, b01, b2)))
    cost = pl.CostEstimate(
        flops=2 * b_pad * (D_HID * D_IN + D_HID * D_HID + D_OUT * D_HID),
        transcendentals=0,
        bytes_accessed=b_pad * (D_IN + D_OUT) * 4 + param_bytes,
    )

    yt = pl.pallas_call(
        _fused_forward_kernel,
        out_shape=jax.ShapeDtypeStruct((D_OUT, b_pad), jnp.float32),
        grid=grid,
        in_specs=[
            pl.BlockSpec((D_HID, D_IN), lambda i: (0, 0)),          # resident W0
            pl.BlockSpec((D_HID, D_HID), lambda i: (0, 0)),         # resident W1
            pl.BlockSpec((D_OUT, D_HID), lambda i: (0, 0)),         # resident W2 (un-padded)
            pl.BlockSpec((2, D_HID, 1), lambda i: (0, 0, 0)),       # resident hidden biases
            pl.BlockSpec((D_OUT, 1), lambda i: (0, 0)),             # resident output bias
            pl.BlockSpec((D_IN, tb), lambda i: (0, i)),             # batch tile of x^T
        ],
        out_specs=pl.BlockSpec((D_OUT, tb), lambda i: (0, i)),
        compiler_params=pltpu.CompilerParams(
            dimension_semantics=("parallel",),       # shard batch tiles across v7x TCs
            vmem_limit_bytes=_vmem_limit_bytes(tb, param_bytes),
        ),
        cost_estimate=cost,
    )(w0, w1, w2, b01, b2, xt)

    return yt[:, :batch]


def parallel_serialized_forward(x, params, *, compute_dtype=jnp.float32):
    """Row-major convenience wrapper matching the PyTorch module interface.

    x: (batch, N_INPUTS) -> (batch, D_OUT).  Adds one transpose on each side;
    prefer `parallel_serialized_forward_t` when the caller can keep the
    feature-major (D, batch) layout.
    """
    batch = x.shape[0]
    assert x.shape[1] == D_IN
    if batch == 0:
        return jnp.zeros((0, D_OUT), jnp.float32)
    yt = parallel_serialized_forward_t(x.T, params, compute_dtype=compute_dtype)
    return yt.T


# ---------------------------------------------------------------------------
# Pure-JAX reference (unfused, same param list) for sanity checking.
# ---------------------------------------------------------------------------
def reference_forward(x, params):
    idx = 0
    for stage in STAGE_STRUCTURE:
        outs = []
        for sublayer in stage:
            h = x
            n_lin = len(sublayer)
            for li in range(n_lin):
                w, b = params[idx]
                idx += 1
                h = h @ w + b
                if li < n_lin - 1:
                    h = jnp.maximum(h, 0.0)
            outs.append(h)
        x = jnp.concatenate(outs, axis=-1)
    return x


if __name__ == "__main__":
    key = jax.random.PRNGKey(0)
    pkey, xkey = jax.random.split(key)
    params = init_params(pkey)

    batch = 4
    x = jax.random.normal(xkey, (batch, N_INPUTS), jnp.float32)
    ref = reference_forward(x, params)

    # Fast path: feature-major layout across the call boundary (no host transposes).
    yt = parallel_serialized_forward_t(x.T, params)
    yt = jax.block_until_ready(yt)
    assert yt.shape == (D_OUT, batch)
    assert jnp.allclose(yt.T, ref, atol=1e-4, rtol=1e-5), "mismatch (feature-major path)"

    # Row-major convenience wrapper (matches the PyTorch module interface).
    y = parallel_serialized_forward(x, params)
    y = jax.block_until_ready(y)
    assert y.shape == ref.shape
    assert jnp.allclose(y, ref, atol=1e-4, rtol=1e-5), "mismatch (row-major wrapper)"

    # Larger batch: exercises >=2 grid steps (v7x megacore path) + padding logic.
    xb = jax.random.normal(jax.random.fold_in(xkey, 1), (300, N_INPUTS), jnp.float32)
    yb = jax.block_until_ready(parallel_serialized_forward(xb, params))
    assert jnp.allclose(yb, reference_forward(xb, params), atol=1e-3, rtol=1e-4), \
        "mismatch (multi-tile batch)"

    # Optional bf16-operand path (f32 accumulation); loose tolerance by design.
    y16 = jax.block_until_ready(
        parallel_serialized_forward(x, params, compute_dtype=jnp.bfloat16))
    assert jnp.allclose(y16, ref, rtol=1e-1, atol=1.0), "mismatch (bf16 path)"

    print("KERNEL_OK")
</pallas_src>

<mosaic_0001>
module attributes {stable_mosaic.version = 11 : i64} {
  func.func @_fused_forward_kernel(%arg0: i32, %arg1: memref<32x8xf32, #tpu.memory_space<vmem>>, %arg2: memref<32x32xf32, #tpu.memory_space<vmem>>, %arg3: memref<8x32xf32, #tpu.memory_space<vmem>>, %arg4: memref<2x32x1xf32, #tpu.memory_space<vmem>>, %arg5: memref<8x1xf32, #tpu.memory_space<vmem>>, %arg6: memref<8x128xf32, #tpu.memory_space<vmem>>, %arg7: memref<8x128xf32, #tpu.memory_space<vmem>>) attributes {dimension_semantics = [#tpu.dimension_semantics<parallel>], iteration_bounds = array<i64: 1>, scalar_prefetch = 0 : i64, scratch_operands = 0 : i64, tpu.core_type = #tpu.core_type<tc>, window_params = [{pipeline_mode = #tpu.pipeline_mode<synchronous>, transform_indices = @transform_0, window_bounds = array<i64: 32, 8>}, {pipeline_mode = #tpu.pipeline_mode<synchronous>, transform_indices = @transform_1, window_bounds = array<i64: 32, 32>}, {pipeline_mode = #tpu.pipeline_mode<synchronous>, transform_indices = @transform_2, window_bounds = array<i64: 8, 32>}, {pipeline_mode = #tpu.pipeline_mode<synchronous>, transform_indices = @transform_3, window_bounds = array<i64: 2, 32, 1>}, {pipeline_mode = #tpu.pipeline_mode<synchronous>, transform_indices = @transform_4, window_bounds = array<i64: 8, 1>}, {transform_indices = @transform_5, window_bounds = array<i64: 8, 128>}, {transform_indices = @transform_6, window_bounds = array<i64: 8, 128>}]} {
    %c0 = arith.constant 0 : index
    %c0_0 = arith.constant 0 : index
    %0 = vector.load %arg6[%c0, %c0_0] : memref<8x128xf32, #tpu.memory_space<vmem>>, vector<8x128xf32>
    %c0_1 = arith.constant 0 : index
    %c0_2 = arith.constant 0 : index
    %1 = vector.load %arg1[%c0_1, %c0_2] : memref<32x8xf32, #tpu.memory_space<vmem>>, vector<32x8xf32>
    %cst = arith.constant dense<0.000000e+00> : vector<32x128xf32>
    %2 = tpu.matmul %1, %0, %cst {dimension_numbers = #tpu.dot_dimension_numbers<[1], [0], [0], [1], [0, 0, 1, 1], [], []>} : vector<32x8xf32>, vector<8x128xf32>, vector<32x128xf32> -> vector<32x128xf32>
    %c0_3 = arith.constant 0 : index
    %c0_4 = arith.constant 0 : index
    %c0_5 = arith.constant 0 : index
    %3 = vector.load %arg4[%c0_3, %c0_4, %c0_5] : memref<2x32x1xf32, #tpu.memory_space<vmem>>, vector<1x32x1xf32>
    %4 = vector.shape_cast %3 : vector<1x32x1xf32> to vector<32x1xf32>
    %5 = vector.broadcast %4 : vector<32x1xf32> to vector<32x128xf32>
    %6 = arith.addf %2, %5 : vector<32x128xf32>
    %cst_6 = arith.constant 0.000000e+00 : f32
    %7 = vector.broadcast %cst_6 : f32 to vector<32x128xf32>
    %8 = arith.maximumf %6, %7 : vector<32x128xf32>
    %c0_7 = arith.constant 0 : index
    %c0_8 = arith.constant 0 : index
    %9 = vector.load %arg2[%c0_7, %c0_8] : memref<32x32xf32, #tpu.memory_space<vmem>>, vector<32x32xf32>
    %cst_9 = arith.constant dense<0.000000e+00> : vector<32x128xf32>
    %10 = tpu.matmul %9, %8, %cst_9 {dimension_numbers = #tpu.dot_dimension_numbers<[1], [0], [0], [1], [0, 0, 1, 1], [], []>} : vector<32x32xf32>, vector<32x128xf32>, vector<32x128xf32> -> vector<32x128xf32>
    %c1 = arith.constant 1 : index
    %c0_10 = arith.constant 0 : index
    %c0_11 = arith.constant 0 : index
    %11 = vector.load %arg4[%c1, %c0_10, %c0_11] : memref<2x32x1xf32, #tpu.memory_space<vmem>>, vector<1x32x1xf32>
    %12 = vector.shape_cast %11 : vector<1x32x1xf32> to vector<32x1xf32>
    %13 = vector.broadcast %12 : vector<32x1xf32> to vector<32x128xf32>
    %14 = arith.addf %10, %13 : vector<32x128xf32>
    %cst_12 = arith.constant 0.000000e+00 : f32
    %15 = vector.broadcast %cst_12 : f32 to vector<32x128xf32>
    %16 = arith.maximumf %14, %15 : vector<32x128xf32>
    %c0_13 = arith.constant 0 : index
    %c0_14 = arith.constant 0 : index
    %17 = vector.load %arg3[%c0_13, %c0_14] : memref<8x32xf32, #tpu.memory_space<vmem>>, vector<8x32xf32>
    %cst_15 = arith.constant dense<0.000000e+00> : vector<8x128xf32>
    %18 = tpu.matmul %17, %16, %cst_15 {dimension_numbers = #tpu.dot_dimension_numbers<[1], [0], [0], [1], [0, 0, 1, 1], [], []>} : vector<8x32xf32>, vector<32x128xf32>, vector<8x128xf32> -> vector<8x128xf32>
    %c0_16 = arith.constant 0 : index
    %c0_17 = arith.constant 0 : index
    %19 = vector.load %arg5[%c0_16, %c0_17] : memref<8x1xf32, #tpu.memory_space<vmem>>, vector<8x1xf32>
    %20 = vector.broadcast %19 : vector<8x1xf32> to vector<8x128xf32>
    %21 = arith.addf %18, %20 : vector<8x128xf32>
    %c0_18 = arith.constant 0 : index
    %c0_19 = arith.constant 0 : index
    %22 = vector.load %arg7[%c0_18, %c0_19] : memref<8x128xf32, #tpu.memory_space<vmem>>, vector<8x128xf32>
    tpu.vector_store %arg7[%c0_18, %c0_19], %21 {strides = array<i32>} : memref<8x128xf32, #tpu.memory_space<vmem>>, vector<8x128xf32>,
    return
  }
  func.func @transform_0(%arg0: i32) -> (i32, i32) {
    %c0_i32 = arith.constant 0 : i32
    %c0_i32_0 = arith.constant 0 : i32
    %c0_i32_1 = arith.constant 0 : i32
    return %c0_i32, %c0_i32_0 : i32, i32
  }
  func.func @transform_1(%arg0: i32) -> (i32, i32) {
    %c0_i32 = arith.constant 0 : i32
    %c0_i32_0 = arith.constant 0 : i32
    %c0_i32_1 = arith.constant 0 : i32
    return %c0_i32, %c0_i32_0 : i32, i32
  }
  func.func @transform_2(%arg0: i32) -> (i32, i32) {
    %c0_i32 = arith.constant 0 : i32
    %c0_i32_0 = arith.constant 0 : i32
    %c0_i32_1 = arith.constant 0 : i32
    return %c0_i32, %c0_i32_0 : i32, i32
  }
  func.func @transform_3(%arg0: i32) -> (i32, i32, i32) {
    %c0_i32 = arith.constant 0 : i32
    %c0_i32_0 = arith.constant 0 : i32
    %c0_i32_1 = arith.constant 0 : i32
    %c0_i32_2 = arith.constant 0 : i32
    return %c0_i32, %c0_i32_0, %c0_i32_1 : i32, i32, i32
  }
  func.func @transform_4(%arg0: i32) -> (i32, i32) {
    %c0_i32 = arith.constant 0 : i32
    %c0_i32_0 = arith.constant 0 : i32
    %c0_i32_1 = arith.constant 0 : i32
    return %c0_i32, %c0_i32_0 : i32, i32
  }
  func.func @transform_5(%arg0: i32) -> (i32, i32) {
    %c0_i32 = arith.constant 0 : i32
    %c0_i32_0 = arith.constant 0 : i32
    return %c0_i32, %arg0 : i32, i32
  }
  func.func @transform_6(%arg0: i32) -> (i32, i32) {
    %c0_i32 = arith.constant 0 : i32
    %c0_i32_0 = arith.constant 0 : i32
    return %c0_i32, %arg0 : i32, i32
  }
}

</mosaic_0001>

<bundles_post_ra>
// kernel: tpu_custom_call.1
= control target key start
LH: loop header
LB: loop body
LE: loop exit
PB: predicated region body
PF: predicated region fallthrough
CT: control target
= control target key end

     0   :  { %vm53_vm0 = vcmask 64512   ;;  %v490_v5 = vmov 0   ;;  %s608_s0 = inlined_call_operand.vmem [shape: f32[32,8], index: 0, kind: input, shape index: {}]   ;;  %s609_s1 = inlined_call_operand.vmem [shape: f32[32,32], index: 1, kind: input, shape index: {}]   ;;  %s610_s2 = inlined_call_operand.vmem [shape: f32[8,32], index: 2, kind: input, shape index: {}]   ;;  %s611_s3 = inlined_call_operand.vmem [shape: f32[2,32,1], index: 3, kind: input, shape index: {}]   ;;  %s612_s4 = inlined_call_operand.vmem [shape: f32[8,1], index: 4, kind: input, shape index: {}]   ;;  %s613_s5 = inlined_call_operand.vmem [shape: f32[8,128], index: 5, kind: input, shape index: {}]   ;;  %s614_s6 = inlined_call_operand.hbm [shape: f32[8,128], index: 6, kind: output, shape index: {}]  }
   0x1   :  { %v24_v0 = vld [vmem:[%s613_s5] sm:$0xff]  ;;  %v26_v2 = vld [vmem:[%s608_s0 + $0x8] sm:$0xff]  ;;  %v27_v3 = vld [vmem:[%s608_s0 + $0x10] sm:$0xff]  ;;  %464 = vset.pattern.permute.xlu0 %v490_v5  ;;  %465 = vset.pattern.permute.xlu1 %v490_v5 }
   0x2   :  { %v25_v1 = vld [vmem:[%s608_s0] sm:$0xff]  ;;  %412 = vmatprep.subr.mxu0 %v24_v0  ;;  %v31_v6 = vld [vmem:[%s611_s3 + $0x10] sm:$0xff]  ;;  %v28_v7 = vld [vmem:[%s608_s0 + $0x18] sm:$0xff] }
   0x3   :  { %414 = vmatprep.mubr.msk.f32.mxu0 %vm53_vm0, %v25_v1  ;;  %v29_v4 = vld [vmem:[%s611_s3] sm:$0xff]  ;;  %413 = vmatpush3.msra.mxu0 %v24_v0  ;;  %v30_v8 = vld [vmem:[%s611_s3 + $0x8] sm:$0xff] }
   0x4   :  { %415 = vmatmul.mubr.msk.f32.vlgmr.msra.gmra.mrb[0].mxu0 %vm53_vm0, %v26_v2  ;;  %35 = vperm.xlu0 %464, %v29_v4  }
   0x5   :  { %417 = vmatprep.mubr.msk.f32.mxu0 %vm53_vm0, %v27_v3 }
   0x6   :  { %11 = vsyncpa [#allocation3], 0  ;;  %45 = vperm.xlu1 %465, %v31_v6   ;;  %v32_v9 = vld [vmem:[%s611_s3 + $0x18] sm:$0xff]  ;;  %v385_v10 = vld [vmem:[%s611_s3 + $0x20] sm:$0xff]  ;;  %vm184_vm1 = vcmask 261120   ;;  %v491_v37 = vmov 0.0|0.0  }
   0x7   :  { %v386_v11 = vld [vmem:[%s611_s3 + $0x28] sm:$0xff]  ;;  %v387_v12 = vld [vmem:[%s611_s3 + $0x30] sm:$0xff]  ;;  %v388_v13 = vld [vmem:[%s611_s3 + $0x38] sm:$0xff]  ;;  %453 = vmatprep.subr.bf16.mxu0 %v491_v37  ;;  %vm492_vm2 = vmmov 0   ;;  %v493_v38 = vmov 0.0   ;;  %s494_s30 = smov [#allocation2]  }
   0x8   :  { %418 = vmatmul.mubr.msk.f32.gmra.mrb[2].mxu0 %vm53_vm0, %v28_v7  ;;  %40 = vperm.xlu0 %464, %v30_v8   ;;  %v287_v14 = vld [vmem:[%s612_s4] sm:$0xff]  ;;  %v156_v34 = vld [vmem:[%s609_s1 + $0x8] sm:$0xff]  ;;  %v157_v35 = vld [vmem:[%s609_s1 + $0x10] sm:$0xff]  ;;  %s373_s5 = sshll.u32 %s494_s30, 4  ;;  %s374_s5 = int_to_ptr.vmem [resolvable:$true] %s373_s5 }
   0x9   :  { %v155_v15 = vld [vmem:[%s609_s1] sm:$0xff]  ;;  %v158_v36 = vld [vmem:[%s609_s1 + $0x18] sm:$0xff]  ;;  %442 = vmatprep.mubr.msk.f32.mxu0 %vm492_vm2, %v493_v38  ;;  %s466_s7 = scalar_lea.vmem %s374_s5, 128  ;;  %p471_p1 = scmp.lt.s32.totalorder %s374_s5, %s374_s5 }
   0xa   :  { %50 = vperm.xlu1 %465, %v32_v9   ;;  %428 = vmatprep.mubr.msk.f32.mxu1 %vm184_vm1, %v155_v15  ;;  %v286_v57 = vld [vmem:[%s610_s2] sm:$0xff]  ;;  %p467_p0 = scmp.ne.s32.totalorder %s374_s5, %s466_s7  ;;  %p472_p2 = scmp.lt.s32.totalorder %s466_s7, %s466_s7 }
   0xc   :  { %166 = vperm.xlu0 %464, %v385_v10   ;;  %p473_p3 = por %p472_p2, %p471_p1 }
   0xe   :  { %171 = vperm.xlu1 %465, %v386_v11   ;;  %p474_p4 = pnand %p473_p3, %p467_p0 }
  0x10   :  { %176 = vperm.xlu0 %464, %v387_v12  }
  0x12   :  { %181 = vperm.xlu1 %465, %v388_v13  }
  0x14   :  { %290 = vperm.xlu0 %464, %v287_v14  }
  0x83   :  { %v36_v16 = vpop.permute.xlu0 %35 }
  0x85   :  { %v46_v17 = vpop.permute.xlu1 %45 }
  0x87   :  { %v41_v18 = vpop.permute.xlu0 %40 }
  0x89   :  { %v51_v24 = vpop.permute.xlu1 %50 }
  0x8b   :  { %v167_v40 = vpop.permute.xlu0 %166 }
  0x8d   :  { %v172_v39 = vpop.permute.xlu1 %171 }
  0x8f   :  { %v177_v49 = vpop.permute.xlu0 %176 }
  0x91   :  { %v182_v46 = vpop.permute.xlu1 %181 }
  0x93   :  { %v291_v58 = vpop.permute.xlu0 %290 }
  0xd7   :  { %v416_v19 = vpop.f32.mrb[0].mxu0 }
  0xd8   :  { %v138_v20 = vadd.f32 %v416_v19, %v41_v18  ;;  %v132_v21 = vpop.f32.mrb[1].mxu0 }
  0xd9   :  { %v133_v22 = vadd.f32 %v132_v21, %v36_v16 }
  0xda   :  { %v152_v23 = vmax.f32 %v138_v20, 0.0 }
  0xdb   :  { %v151_v25 = vmax.f32 %v133_v22, 0.0  ;;  %v419_v26 = vpop.f32.mrb[2].mxu0 }
  0xdc   :  { %v148_v27 = vadd.f32 %v419_v26, %v51_v24  ;;  %v142_v28 = vpop.f32.mrb[3].mxu0 }
  0xdd   :  { %v143_v29 = vadd.f32 %v142_v28, %v46_v17  ;;  %v445_v30 = vpack.c.bf16 %v152_v23, %v151_v25 }
  0xde   :  { %v154_v31 = vmax.f32 %v148_v27, 0.0 }
  0xdf   :  { %v153_v32 = vmax.f32 %v143_v29, 0.0  ;;  %446 = vmatprep.subr.bf16.mxu1 %v445_v30 }
  0xe0   :  { %448 = vmatpush3.bf16.msra.mxu1 %v445_v30 }
  0xe1   :  { %v449_v33 = vpack.c.bf16 %v154_v31, %v153_v32 }
  0xe3   :  { %450 = vmatprep.subr.bf16.mxu1 %v449_v33 }
  0xe4   :  { %452 = vmatpush3.bf16.msra.mxu1 %v449_v33 }
  0xe7   :  { %429 = vmatmul.mubr.msk.f32.vlgmr.msra.gmra.mrb[0].mxu1 %vm184_vm1, %v156_v34 }
  0xe8   :  { %431 = vmatprep.mubr.msk.f32.mxu1 %vm184_vm1, %v157_v35 }
  0xeb   :  { %432 = vmatmul.mubr.msk.f32.gmra.mrb[2].mxu1 %vm184_vm1, %v158_v36 }
 0x1ba   :  { %v430_v41 = vpop.f32.mrb[0].mxu1 }
 0x1bb   :  { %v269_v42 = vadd.f32 %v430_v41, %v172_v39  ;;  %v263_v43 = vpop.f32.mrb[1].mxu1 }
 0x1bc   :  { %v264_v44 = vadd.f32 %v263_v43, %v167_v40 }
 0x1bd   :  { %v283_v45 = vmax.f32 %v269_v42, 0.0 }
 0x1be   :  { %v282_v47 = vmax.f32 %v264_v44, 0.0  ;;  %v433_v48 = vpop.f32.mrb[2].mxu1 }
 0x1bf   :  { %v279_v50 = vadd.f32 %v433_v48, %v182_v46  ;;  %v273_v51 = vpop.f32.mrb[3].mxu1 }
 0x1c0   :  { %v454_v52 = vpack.c.bf16 %v283_v45, %v282_v47  ;;  %v274_v53 = vadd.f32 %v273_v51, %v177_v49 }
 0x1c1   :  { %v285_v54 = vmax.f32 %v279_v50, 0.0 }
 0x1c2   :  { %v284_v55 = vmax.f32 %v274_v53, 0.0  ;;  %455 = vmatpush3.bf16.msra.mxu0 %v454_v52 }
 0x1c3   :  { %456 = vmatprep.subr.bf16.mxu0 %v491_v37 }
 0x1c4   :  { %v457_v56 = vpack.c.bf16 %v285_v54, %v284_v55 }
 0x1c6   :  { %458 = vmatpush3.bf16.msra.mxu0 %v457_v56 }
 0x1c9   :  { %443 = vmatmul.mubr.msk.f32.vlgmr.msra.gmra.mrb[4].mxu0 %vm184_vm1, %v286_v57 }
 0x29c   :  { %v362_v59 = vpop.f32.mrb[4].mxu0 }
 0x29d   :  { %v363_v60 = vadd.f32 %v362_v59, %v291_v58  ;;  %v444_v61 = vpop.f32.mrb[5].mxu0 }
 0x29f   :  { %366 = vst [vmem:[#allocation2] sm:$0xff] %v363_v60 }
 0x2a0   :  { %477 = shalt.err (!%p474_p4)
}
 0x2a1   :  { %s478_s2 = scalar_lea.hbm %s614_s6, 128 }
 0x2a2   :  { %p479_p5 = scmp.ne.s32.totalorder %s614_s6, %s478_s2  ;;  %p482_p6 = scmp.lt.u32.totalorder %s478_s2, %s614_s6 }
 0x2a4   :  { %p484_p7 = pnand %p482_p6, %p479_p5 }
 0x2a6   :  { %487 = shalt.err (!%p484_p7)
}
 0x2a7   :  { %376 = dma.vmem_to_hbm [thread:$0]  %s374_s5, 128, %s614_s6, [#allocation3]  }
 0x2a8   :  { %488 = dma.done.wait [#allocation3], 128  }
 0x2a9   :  { %489 = vsyncadd [#allocation3], 4294967168 }
 0x2aa   :  { %380 = vsyncpa [#allocation3], 1 }

</bundles_post_ra>
